<compile_context>
chip_gen: v6e
topology: v6e:2x2x1
jax: 0.10.0
libtpu: 0.0.40
codegen_flags: <defaults>
</compile_context>

<pallas_src>
import functools

import jax
import jax.numpy as jnp
from jax.experimental import pallas as pl
from jax.experimental.pallas import tpu as pltpu

_LANES = 128
_SUBLANES = 8


def _cdiv(a, b):
    return -(-a // b)


def _round_up(a, b):
    return _cdiv(a, b) * b


def _chip_defaults():
    """(tile_rows, n_par, vmem_limit_bytes) tuned per TPU generation."""
    try:
        kind = jax.devices()[0].device_kind.lower()
    except Exception:  # pragma: no cover - defensive
        kind = ""
    if "v7" in kind:
        # 2 TCs, 64 MiB VMEM/TC: shard rows across cores, 4 MiB blocks, explicit cap.
        return 8192, 2, 48 << 20
    if "v6" in kind or "trillium" in kind:
        # Single TC, 128 MiB physical VMEM: big blocks, raise the 32 MiB scoped default.
        return 8192, 1, 64 << 20
    if "v5 lite" in kind or "v5e" in kind or "v5litepod" in kind:
        # 16 MiB scoped-VMEM default: 1 MiB blocks keep the working set ~6 MiB.
        return 2048, 1, None
    # Unknown / older chips: conservative.
    return 2048, 1, None


def _correction_loss_kernel(demag_ref, reduced_ref, pred_ref, out_ref):
    i = pl.program_id(1)  # reduction axis ("arbitrary"); out block resident across it

    @pl.when(i == 0)
    def _init():
        out_ref[...] = jnp.zeros_like(out_ref)

    demag = demag_ref[...].astype(jnp.float32)
    reduced = reduced_ref[...].astype(jnp.float32)
    pred = pred_ref[...].astype(jnp.float32)

    # Hot path: elementwise correction + residual + abs, folded to one (8, 128) tile
    # and accumulated straight into the resident output block (no big scratch, no
    # full-tile store per step).
    err = jnp.abs(demag / reduced - pred)
    tr = err.shape[0]
    out_ref[...] += jnp.sum(err.reshape(tr // _SUBLANES, _SUBLANES, _LANES), axis=0)


@functools.partial(jax.jit, static_argnums=(3, 4, 5))
def _loss_from_parts(demag, reduced, pred, tile_rows, n_par, vmem_limit_bytes):
    demag = demag.reshape(-1)
    reduced = reduced.reshape(-1)
    pred = pred.reshape(-1)

    n_elem = demag.shape[0]  # TRUE element count (N * 3)
    assert reduced.shape[0] == n_elem and pred.shape[0] == n_elem

    # --- lane-dense (rows, 128) layout with minimal padding ------------------
    rows_needed = max(1, _cdiv(n_elem, _LANES))
    rows_rounded = _round_up(rows_needed, _SUBLANES)

    tr_cap = max(_SUBLANES, _round_up(int(tile_rows), _SUBLANES))
    steps = _cdiv(rows_rounded, n_par * tr_cap)           # reduction-axis extent
    # Spread rows evenly over the grid -> padding is at most a few sublanes/cell.
    tr = _round_up(_cdiv(rows_rounded, n_par * steps), _SUBLANES)
    rows_padded = n_par * steps * tr

    pad = rows_padded * _LANES - n_elem
    demag = jnp.pad(demag, (0, pad)).reshape(rows_padded, _LANES)
    # Pad 'reduced' with 1.0 (never 0.0) so padded lanes give |0/1 - 0| = 0.
    reduced = jnp.pad(reduced, (0, pad), constant_values=1.0).reshape(rows_padded, _LANES)
    pred = jnp.pad(pred, (0, pad)).reshape(rows_padded, _LANES)

    # Each parallel chunk streams a contiguous run of row-blocks.
    in_spec = pl.BlockSpec((tr, _LANES), lambda c, i: (c * steps + i, 0))

    compiler_kwargs = dict(
        # Leading axis shards rows across TensorCores (v7x); the reduction axis must
        # stay "arbitrary" because the output block persists across it.
        dimension_semantics=("parallel", "arbitrary"),
    )
    if vmem_limit_bytes is not None:
        compiler_kwargs["vmem_limit_bytes"] = int(vmem_limit_bytes)

    partials = pl.pallas_call(
        _correction_loss_kernel,
        out_shape=jax.ShapeDtypeStruct((n_par * _SUBLANES, _LANES), jnp.float32),
        grid_spec=pltpu.PrefetchScalarGridSpec(
            num_scalar_prefetch=0,
            grid=(n_par, steps),
            in_specs=[in_spec, in_spec, in_spec],
            out_specs=pl.BlockSpec((_SUBLANES, _LANES), lambda c, i: (c, 0)),
        ),
        compiler_params=pltpu.CompilerParams(**compiler_kwargs),
    )(demag, reduced, pred)

    # Tiny final reduction + mean over the TRUE (unpadded) element count.
    return jnp.sum(partials) / jnp.float32(n_elem)


@functools.partial(jax.jit, static_argnums=(2, 3, 4))
def _loss_from_packed(B, B_pred, tile_rows, n_par, vmem_limit_bytes):
    # Slice + pad + reshape fuse into one relayout copy per array under this jit.
    return _loss_from_parts(B[..., :3], B[..., 3:], B_pred, tile_rows, n_par, vmem_limit_bytes)


def correction_loss(B, B_pred, *, tile_rows=None, n_par=None):
    """Pallas equivalent of CorrectionLoss(nn.L1Loss)(B, B_pred)."""
    d_tile, d_par, d_vmem = _chip_defaults()
    tile_rows = d_tile if tile_rows is None else int(tile_rows)
    n_par = d_par if n_par is None else int(n_par)
    return _loss_from_packed(B, B_pred, tile_rows, n_par, d_vmem)


def correction_loss_parts(B_demag, B_reduced, B_pred, *, tile_rows=None, n_par=None):
    """Same loss, but skips the interleaved-B split for callers that already have parts."""
    d_tile, d_par, d_vmem = _chip_defaults()
    tile_rows = d_tile if tile_rows is None else int(tile_rows)
    n_par = d_par if n_par is None else int(n_par)
    return _loss_from_parts(B_demag, B_reduced, B_pred, tile_rows, n_par, d_vmem)


def correction_loss_ref(B, B_pred):
    B_demag, B_reduced = B[..., :3], B[..., 3:]
    return jnp.mean(jnp.abs(B_demag / B_reduced - B_pred))


if __name__ == "__main__":
    key = jax.random.PRNGKey(0)
    k1, k2, k3 = jax.random.split(key, 3)

    # Small shapes consistent with the module: B = [demag(3), reduced(3)].
    batch, pts = 2, 8
    demag = jax.random.normal(k1, (batch, pts, 3), dtype=jnp.float32)
    reduced = jax.random.uniform(
        k2, (batch, pts, 3), minval=0.5, maxval=1.5, dtype=jnp.float32
    )
    B = jnp.concatenate([demag, reduced], axis=-1)               # (2, 8, 6)
    B_pred = jax.random.normal(k3, (batch, pts, 3), dtype=jnp.float32)

    loss = jax.block_until_ready(correction_loss(B, B_pred))
    ref = correction_loss_ref(B, B_pred)
    assert jnp.allclose(loss, ref, rtol=1e-5, atol=1e-6), (loss, ref)

    # Split-parts entry point (no interleaved-B relayout at all).
    loss_p = jax.block_until_ready(correction_loss_parts(demag, reduced, B_pred))
    assert jnp.allclose(loss_p, ref, rtol=1e-5, atol=1e-6), (loss_p, ref)

    # Small tile that exercises multi-step accumulation along the reduction axis
    # and the padded-tail path.
    k4, k5, k6 = jax.random.split(jax.random.PRNGKey(1), 3)
    d2 = jax.random.normal(k4, (7, 200, 3), dtype=jnp.float32)
    r2 = jax.random.uniform(k5, (7, 200, 3), minval=0.5, maxval=1.5, dtype=jnp.float32)
    B2 = jnp.concatenate([d2, r2], axis=-1)                      # (7, 200, 6)
    P2 = jax.random.normal(k6, (7, 200, 3), dtype=jnp.float32)
    loss2 = jax.block_until_ready(correction_loss(B2, P2, tile_rows=8))
    ref2 = correction_loss_ref(B2, P2)
    assert jnp.allclose(loss2, ref2, rtol=1e-5, atol=1e-6), (loss2, ref2)

    # Default (chip-tuned) config on a mid-size input.
    k7, k8, k9 = jax.random.split(jax.random.PRNGKey(2), 3)
    d3 = jax.random.normal(k7, (4, 3000, 3), dtype=jnp.float32)
    r3 = jax.random.uniform(k8, (4, 3000, 3), minval=0.5, maxval=1.5, dtype=jnp.float32)
    B3 = jnp.concatenate([d3, r3], axis=-1)
    P3 = jax.random.normal(k9, (4, 3000, 3), dtype=jnp.float32)
    loss3 = jax.block_until_ready(correction_loss(B3, P3))
    ref3 = correction_loss_ref(B3, P3)
    assert jnp.allclose(loss3, ref3, rtol=1e-5, atol=1e-6), (loss3, ref3)

    print("KERNEL_OK")
</pallas_src>

<mosaic_0001>
module attributes {stable_mosaic.version = 11 : i64} {
  func.func @_correction_loss_kernel(%arg0: i32, %arg1: i32, %arg2: memref<8x128xf32, #tpu.memory_space<vmem>>, %arg3: memref<8x128xf32, #tpu.memory_space<vmem>>, %arg4: memref<8x128xf32, #tpu.memory_space<vmem>>, %arg5: memref<8x128xf32, #tpu.memory_space<vmem>>) attributes {dimension_semantics = [#tpu.dimension_semantics<parallel>, #tpu.dimension_semantics<arbitrary>], iteration_bounds = array<i64: 1, 1>, scalar_prefetch = 0 : i64, scratch_operands = 0 : i64, tpu.core_type = #tpu.core_type<tc>, window_params = [{transform_indices = @transform_0, window_bounds = array<i64: 8, 128>}, {transform_indices = @transform_1, window_bounds = array<i64: 8, 128>}, {transform_indices = @transform_2, window_bounds = array<i64: 8, 128>}, {transform_indices = @transform_3, window_bounds = array<i64: 8, 128>}]} {
    %c0_i32 = arith.constant 0 : i32
    %0 = arith.cmpi eq, %arg1, %c0_i32 : i32
    %1 = arith.extui %0 : i1 to i32
    %c0_i32_0 = arith.constant 0 : i32
    %2 = arith.cmpi ne, %1, %c0_i32_0 : i32
    scf.if %2 {
      %cst_10 = arith.constant 0.000000e+00 : f32
      %14 = vector.broadcast %cst_10 : f32 to vector<8x128xf32>
      %c0_11 = arith.constant 0 : index
      %c0_12 = arith.constant 0 : index
      %15 = vector.load %arg5[%c0_11, %c0_12] : memref<8x128xf32, #tpu.memory_space<vmem>>, vector<8x128xf32>
      tpu.vector_store %arg5[%c0_11, %c0_12], %14 {strides = array<i32>} : memref<8x128xf32, #tpu.memory_space<vmem>>, vector<8x128xf32>,
    } else {
    }
    %c0 = arith.constant 0 : index
    %c0_1 = arith.constant 0 : index
    %3 = vector.load %arg2[%c0, %c0_1] : memref<8x128xf32, #tpu.memory_space<vmem>>, vector<8x128xf32>
    %c0_2 = arith.constant 0 : index
    %c0_3 = arith.constant 0 : index
    %4 = vector.load %arg3[%c0_2, %c0_3] : memref<8x128xf32, #tpu.memory_space<vmem>>, vector<8x128xf32>
    %c0_4 = arith.constant 0 : index
    %c0_5 = arith.constant 0 : index
    %5 = vector.load %arg4[%c0_4, %c0_5] : memref<8x128xf32, #tpu.memory_space<vmem>>, vector<8x128xf32>
    %6 = arith.divf %3, %4 : vector<8x128xf32>
    %7 = arith.subf %6, %5 : vector<8x128xf32>
    %8 = math.absf %7 : vector<8x128xf32>
    %c0_6 = arith.constant 0 : index
    %c0_7 = arith.constant 0 : index
    %9 = vector.load %arg5[%c0_6, %c0_7] : memref<8x128xf32, #tpu.memory_space<vmem>>, vector<8x128xf32>
    %10 = vector.shape_cast %8 : vector<8x128xf32> to vector<1x8x128xf32>
    %cst = arith.constant dense<0.000000e+00> : vector<8x128xf32>
    %11 = vector.multi_reduction <add>, %10, %cst [0] : vector<1x8x128xf32> to vector<8x128xf32>
    %12 = arith.addf %9, %11 : vector<8x128xf32>
    %c0_8 = arith.constant 0 : index
    %c0_9 = arith.constant 0 : index
    %13 = vector.load %arg5[%c0_8, %c0_9] : memref<8x128xf32, #tpu.memory_space<vmem>>, vector<8x128xf32>
    tpu.vector_store %arg5[%c0_8, %c0_9], %12 {strides = array<i32>} : memref<8x128xf32, #tpu.memory_space<vmem>>, vector<8x128xf32>,
    return
  }
  func.func @transform_0(%arg0: i32, %arg1: i32) -> (i32, i32) {
    %c1_i32 = arith.constant 1 : i32
    %0 = arith.muli %arg0, %c1_i32 : i32
    %1 = arith.addi %0, %arg1 : i32
    %c0_i32 = arith.constant 0 : i32
    %c0_i32_0 = arith.constant 0 : i32
    return %1, %c0_i32 : i32, i32
  }
  func.func @transform_1(%arg0: i32, %arg1: i32) -> (i32, i32) {
    %c1_i32 = arith.constant 1 : i32
    %0 = arith.muli %arg0, %c1_i32 : i32
    %1 = arith.addi %0, %arg1 : i32
    %c0_i32 = arith.constant 0 : i32
    %c0_i32_0 = arith.constant 0 : i32
    return %1, %c0_i32 : i32, i32
  }
  func.func @transform_2(%arg0: i32, %arg1: i32) -> (i32, i32) {
    %c1_i32 = arith.constant 1 : i32
    %0 = arith.muli %arg0, %c1_i32 : i32
    %1 = arith.addi %0, %arg1 : i32
    %c0_i32 = arith.constant 0 : i32
    %c0_i32_0 = arith.constant 0 : i32
    return %1, %c0_i32 : i32, i32
  }
  func.func @transform_3(%arg0: i32, %arg1: i32) -> (i32, i32) {
    %c0_i32 = arith.constant 0 : i32
    %c0_i32_0 = arith.constant 0 : i32
    return %arg0, %c0_i32 : i32, i32
  }
}

</mosaic_0001>

<bundles_post_ra>
// kernel: _loss_from_parts.1
= control target key start
LH: loop header
LB: loop body
LE: loop exit
PB: predicated region body
PF: predicated region fallthrough
CT: control target
= control target key end

     0   :  { %s138_s1 = inlined_call_operand.vmem [shape: f32[8,128], index: 1, kind: input, shape index: {}]   ;;  %s139_s0 = inlined_call_operand.vmem [shape: f32[8,128], index: 0, kind: input, shape index: {}]   ;;  %s140_s2 = inlined_call_operand.vmem [shape: f32[8,128], index: 2, kind: input, shape index: {}]   ;;  %s141_s3 = inlined_call_operand.vmem [shape: f32[8,128], index: 3, kind: output, shape index: {}]  }
   0x1   :  { %v71_v0 = vld [vmem:[%s138_s1] sm:$0xff] }
   0x2   :  { %104 = vrcp.f32 %v71_v0  ;;  %v70_v1 = vld [vmem:[%s139_s0] sm:$0xff] }
   0x3   :  { %v72_v3 = vld [vmem:[%s140_s2] sm:$0xff] }
   0xf   :  { %v105_v2 = vpop.eup %104 }
  0x10   :  { %v74_v4 = vmul.f32 %v105_v2, %v70_v1 }
  0x12   :  { %v75_v5 = vsub.f32 %v74_v4, %v72_v3 }
  0x14   :  { %v76_v6 = vand.u32 2147483647, %v75_v5 }
  0x16   :  { %80 = vst [vmem:[%s141_s3] sm:$0xff] %v76_v6 }

</bundles_post_ra>
